<compile_context>
chip_gen: v5e
topology: v5e:2x2
jax: 0.10.0
libtpu: 0.0.40
codegen_flags: <defaults>
</compile_context>

<pallas_src>
import functools

import jax
import jax.numpy as jnp
from jax.experimental import pallas as pl
from jax.experimental.pallas import tpu as pltpu


def _round_up(x, m):
    return ((x + m - 1) // m) * m


def _patch_embed_kernel(x_ref, w_ref, b_ref, o_ref):
    # Cast activations to bf16 in-register (no extra HBM pass), one
    # (TM, K) @ (K, Ep) MXU matmul, f32 accumulate + f32 bias.
    x_bf16 = x_ref[...].astype(jnp.bfloat16)
    o_ref[...] = (
        jnp.dot(x_bf16, w_ref[...], preferred_element_type=jnp.float32)
        + b_ref[...]
    )


def prepare_patch_embed_params(weight, bias):
    """One-time (per layer) flatten + transpose + pad of the Conv3d params.

    weight: (E, C, t, ph, pw) -> (K, Ep) bf16   (K = C*t*ph*pw, E padded to 128)
    bias  : (E,)              -> (1, Ep) f32
    """
    E = weight.shape[0]
    K = int(weight[0].size)
    Ep = _round_up(E, 128)
    # Row-major (c,t,h,w) flatten matches PyTorch Conv3d weight layout and the
    # x.reshape(N, K) flatten in patch_embed().
    w_flat = jnp.transpose(weight.reshape(E, K)).astype(jnp.bfloat16)   # (K, E)
    b2d = bias.reshape(1, E).astype(jnp.float32)
    if Ep > E:
        w_flat = jnp.pad(w_flat, ((0, 0), (0, Ep - E)))
        b2d = jnp.pad(b2d, ((0, 0), (0, Ep - E)))
    return w_flat, b2d


def _pick_tm(N, K, Ep, x_itemsize, budget_bytes):
    """Largest M tile (<=512, 256-multiple when possible) under the VMEM budget."""
    per_row = 2 * K * x_itemsize + 2 * Ep * 4            # x + out double buffers
    fixed = 2 * K * Ep * 2 + 2 * Ep * 4                  # weight (bf16) + bias
    avail = max(budget_bytes - fixed, per_row * 64)
    tm = max(64, min(512, avail // per_row))
    if tm >= 256:
        tm = (tm // 256) * 256            # full 256x256 MXU tiles on v6e/v7x
    else:
        tm = max(8, (tm // 8) * 8)
    tm = min(tm, _round_up(N, 8))         # don't exceed what N needs
    return max(tm, 8)


@functools.partial(jax.jit, static_argnames=("embed_dim",))
def patch_embed(x, w_flat, b2d, *, embed_dim):
    """x: (N, C, T, H, W); w_flat/b2d from prepare_patch_embed_params."""
    N = x.shape[0]
    K = int(x[0].size)
    Kw, Ep = w_flat.shape
    # Exact-K check: a mismatched patch config must fail loudly, not silently
    # produce a shape-valid but wrong result.
    assert K == Kw, f"token flatten size {K} != weight reduction size {Kw}"

    # Metadata-only flatten (contiguous trailing dims); no pad, no dtype pass.
    x_flat = x.reshape(N, K)
    x_itemsize = jnp.dtype(x_flat.dtype).itemsize

    # Tile selection under a v7x-aware VMEM budget (64 MiB physical there).
    vmem_budget = 40 * 1024 * 1024
    tm = _pick_tm(N, K, Ep, x_itemsize, vmem_budget)
    n_i = pl.cdiv(N, tm)                   # ragged last block masked on store

    footprint = (
        2 * tm * K * x_itemsize            # activation double buffer
        + 2 * tm * Ep * 4                  # f32 output double buffer
        + 2 * K * Ep * 2                   # resident bf16 weight buffers
        + 2 * Ep * 4                       # bias
    )
    vmem_limit = int(min(max(footprint + 4 * 1024 * 1024, 16 * 1024 * 1024),
                         vmem_budget))
    # TODO(synk): for very large embed dims (Ep*K bf16 >> 40 MiB) fall back to
    # an E-tiled outer grid axis; typical ViT dims (<=1536) fit fully resident.

    out = pl.pallas_call(
        _patch_embed_kernel,
        out_shape=jax.ShapeDtypeStruct((N, Ep), jnp.float32),
        grid_spec=pltpu.PrefetchScalarGridSpec(
            num_scalar_prefetch=0,
            grid=(n_i,),
            in_specs=[
                pl.BlockSpec((tm, K), lambda i: (i, 0)),    # activations (streamed)
                pl.BlockSpec((K, Ep), lambda i: (0, 0)),    # weight (fully resident)
                pl.BlockSpec((1, Ep), lambda i: (0, 0)),    # bias (resident)
            ],
            out_specs=pl.BlockSpec((tm, Ep), lambda i: (i, 0)),
        ),
        compiler_params=pltpu.CompilerParams(
            # Single N axis -> v7x megacore shards tokens (disjoint x halves).
            dimension_semantics=("parallel",),
            vmem_limit_bytes=vmem_limit,
        ),
    )(x_flat, w_flat, b2d)

    # For production embed dims (multiples of 128) this slice is a no-op.
    if Ep > embed_dim:
        out = out[:, :embed_dim]
    # Matches PyTorch: self.proj(x).reshape(1, n_toks, self.embed_dim)
    return out.reshape(1, N, embed_dim)


if __name__ == "__main__":
    # Small shapes consistent with the module:
    #   in_channels=4, tubelet_size=2, patch_size=4, embed_dim=32, n_toks=8
    n_toks, C, tubelet, ph, pw, embed_dim = 8, 4, 2, 4, 4, 32

    key = jax.random.PRNGKey(0)
    kx, kw, kb = jax.random.split(key, 3)

    x = jax.random.normal(kx, (n_toks, C, tubelet, ph, pw), dtype=jnp.float32)
    # Deterministic synthetic Conv3d parameters (shape from nn.Conv3d in __init__).
    weight = 0.02 * jax.random.normal(
        kw, (embed_dim, C, tubelet, ph, pw), dtype=jnp.float32
    )
    bias = 0.01 * jax.random.normal(kb, (embed_dim,), dtype=jnp.float32)

    # Param prep (flatten/transpose/pad) hoisted out of the per-call path.
    w_flat, b2d = prepare_patch_embed_params(weight, bias)

    out = patch_embed(x, w_flat, b2d, embed_dim=embed_dim)
    out = jax.block_until_ready(out)

    # Reference check (plain JAX, f32) for the Conv3d-as-matmul semantics.
    ref = (
        jnp.einsum("nctHW,ectHW->ne", x, weight) + bias
    ).reshape(1, n_toks, embed_dim)
    assert out.shape == (1, n_toks, embed_dim)
    # bf16 operands -> loosened tolerance vs the f32 reference.
    assert jnp.allclose(out, ref, atol=2e-2, rtol=2e-2), float(
        jnp.max(jnp.abs(out - ref))
    )

    # TODO(synk): token_mask (data-dependent boolean row gather) is not
    # implemented in-kernel; forward() default token_mask=None is reproduced.
    print("KERNEL_OK")
</pallas_src>

<mosaic_0001>
module attributes {stable_mosaic.version = 11 : i64} {
  func.func @_patch_embed_kernel(%arg0: i32, %arg1: memref<8x128xf32, #tpu.memory_space<vmem>>, %arg2: memref<128x128xbf16, #tpu.memory_space<vmem>>, %arg3: memref<1x128xf32, #tpu.memory_space<vmem>>, %arg4: memref<8x128xf32, #tpu.memory_space<vmem>>) attributes {dimension_semantics = [#tpu.dimension_semantics<parallel>], iteration_bounds = array<i64: 1>, scalar_prefetch = 0 : i64, scratch_operands = 0 : i64, tpu.core_type = #tpu.core_type<tc>, window_params = [{transform_indices = @transform_0, window_bounds = array<i64: 8, 128>}, {pipeline_mode = #tpu.pipeline_mode<synchronous>, transform_indices = @transform_1, window_bounds = array<i64: 128, 128>}, {pipeline_mode = #tpu.pipeline_mode<synchronous>, transform_indices = @transform_2, window_bounds = array<i64: 1, 128>}, {transform_indices = @transform_3, window_bounds = array<i64: 8, 128>}]} {
    %c0 = arith.constant 0 : index
    %c0_0 = arith.constant 0 : index
    %0 = vector.load %arg1[%c0, %c0_0] : memref<8x128xf32, #tpu.memory_space<vmem>>, vector<8x128xf32>
    %1 = arith.truncf %0 : vector<8x128xf32> to vector<8x128xbf16>
    %c0_1 = arith.constant 0 : index
    %c0_2 = arith.constant 0 : index
    %2 = vector.load %arg2[%c0_1, %c0_2] : memref<128x128xbf16, #tpu.memory_space<vmem>>, vector<128x128xbf16>
    %cst = arith.constant dense<0.000000e+00> : vector<8x128xf32>
    %3 = tpu.matmul %1, %2, %cst {dimension_numbers = #tpu.dot_dimension_numbers<[1], [0], [0], [1], [0, 0, 1, 1], [], []>} : vector<8x128xbf16>, vector<128x128xbf16>, vector<8x128xf32> -> vector<8x128xf32>
    %c0_3 = arith.constant 0 : index
    %c0_4 = arith.constant 0 : index
    %4 = vector.load %arg3[%c0_3, %c0_4] : memref<1x128xf32, #tpu.memory_space<vmem>>, vector<1x128xf32>
    %5 = vector.broadcast %4 : vector<1x128xf32> to vector<8x128xf32>
    %6 = arith.addf %3, %5 : vector<8x128xf32>
    %c0_5 = arith.constant 0 : index
    %c0_6 = arith.constant 0 : index
    %7 = vector.load %arg4[%c0_5, %c0_6] : memref<8x128xf32, #tpu.memory_space<vmem>>, vector<8x128xf32>
    tpu.vector_store %arg4[%c0_5, %c0_6], %6 {strides = array<i32>} : memref<8x128xf32, #tpu.memory_space<vmem>>, vector<8x128xf32>,
    return
  }
  func.func @transform_0(%arg0: i32) -> (i32, i32) {
    %c0_i32 = arith.constant 0 : i32
    %c0_i32_0 = arith.constant 0 : i32
    return %arg0, %c0_i32 : i32, i32
  }
  func.func @transform_1(%arg0: i32) -> (i32, i32) {
    %c0_i32 = arith.constant 0 : i32
    %c0_i32_0 = arith.constant 0 : i32
    %c0_i32_1 = arith.constant 0 : i32
    return %c0_i32, %c0_i32_0 : i32, i32
  }
  func.func @transform_2(%arg0: i32) -> (i32, i32) {
    %c0_i32 = arith.constant 0 : i32
    %c0_i32_0 = arith.constant 0 : i32
    %c0_i32_1 = arith.constant 0 : i32
    return %c0_i32, %c0_i32_0 : i32, i32
  }
  func.func @transform_3(%arg0: i32) -> (i32, i32) {
    %c0_i32 = arith.constant 0 : i32
    %c0_i32_0 = arith.constant 0 : i32
    return %arg0, %c0_i32 : i32, i32
  }
}

</mosaic_0001>

<bundles_post_ra>
// kernel: patch_embed.1
= control target key start
LH: loop header
LB: loop body
LE: loop exit
PB: predicated region body
PF: predicated region fallthrough
CT: control target
= control target key end

     0   :  { %s196_s1 = inlined_call_operand.vmem [shape: bf16[128,128], index: 1, kind: input, shape index: {}]   ;;  %s197_s2 = inlined_call_operand.vmem [shape: f32[1,128], index: 2, kind: input, shape index: {}]   ;;  %s198_s0 = inlined_call_operand.vmem [shape: f32[8,128], index: 0, kind: input, shape index: {}]   ;;  %s199_s3 = inlined_call_operand.vmem [shape: f32[8,128], index: 3, kind: output, shape index: {}]  }
   0x1   :  { %v141_v0 = vld [vmem:[%s196_s1 + $0x38] sm:$0xff]  ;;  %v140_v1 = vld [vmem:[%s196_s1 + $0x30] sm:$0xff]  ;;  %v139_v2 = vld [vmem:[%s196_s1 + $0x28] sm:$0xff] }
   0x2   :  { %84 = vmatpush.bf16.msra.mxu0 %v141_v0  ;;  %v138_v3 = vld [vmem:[%s196_s1 + $0x20] sm:$0xff]  ;;  %v137_v4 = vld [vmem:[%s196_s1 + $0x18] sm:$0xff]  ;;  %v136_v5 = vld [vmem:[%s196_s1 + $0x10] sm:$0xff] }
   0x3   :  { %v135_v6 = vld [vmem:[%s196_s1 + $0x8] sm:$0xff]  ;;  %v134_v7 = vld [vmem:[%s196_s1] sm:$0xff] }
   0x4   :  { %v14_v8 = vld [vmem:[%s198_s0] sm:$0xff] }
   0x5   :  { %v15_v9 = vpack.c.bf16 %v14_v8, %v14_v8  ;;  %v142_v10 = vld [vmem:[%s197_s2] ss:$0 sm:$0xff] }
   0x6   :  { %85 = vmatpush.bf16.msra.mxu0 %v140_v1 }
   0xa   :  { %86 = vmatpush.bf16.msra.mxu0 %v139_v2 }
   0xe   :  { %87 = vmatpush.bf16.msra.mxu0 %v138_v3 }
  0x12   :  { %88 = vmatpush.bf16.msra.mxu0 %v137_v4 }
  0x16   :  { %89 = vmatpush.bf16.msra.mxu0 %v136_v5 }
  0x1a   :  { %90 = vmatpush.bf16.msra.mxu0 %v135_v6 }
  0x1e   :  { %91 = vmatpush.bf16.msra.mxu0 %v134_v7 }
  0x21   :  { %92 = vmatmul.bf16.vlgmr.msra.gmra.mxu0 %v15_v9 }
  0x9e   :  { %v93_v11 = vpop.f32.mrf.mxu0 }
  0x9f   :  { %v94_v12 = vadd.f32 %v142_v10, %v93_v11 }
  0xa1   :  { %97 = vst [vmem:[%s199_s3] sm:$0xff] %v94_v12 }
  0xa6   :  { %v95_v13 = vpop.f32.mrf.mxu0 }

</bundles_post_ra>
